<compile_context>
chip_gen: v7x
topology: tpu7x:2x2x1
jax: 0.10.0
libtpu: 0.0.40
codegen_flags: <defaults>
</compile_context>

<pallas_src>
import functools
import math

import jax
import jax.numpy as jnp
from jax.experimental import pallas as pl
from jax.experimental.pallas import tpu as pltpu


def _mha_kernel(q_ref, kh_ref, vh_ref, wq_ref, wfc_ref, bfc_ref, gamma_ref,
                beta_ref, out_ref, attn_ref, *, hg, d_k, d_v, compute_dtype):
    """One (batch, q-tile, head-group) grid step of fused MHA.

    q_ref    : (1, tq, D)        f32   raw query tile (LayerNorm input + residual)
    kh_ref   : (1, hg, Lk, d_k)  cd    pre-projected keys for this head group
    vh_ref   : (1, hg, Lk, d_v)  cd    pre-projected values for this head group
    wq_ref   : (1, D, hg*d_k)    cd    query projection weights (1/sqrt(d_k) folded in)
    wfc_ref  : (hg, d_v, D)      cd    output projection weights (head-major)
    bfc/gamma/beta : (1, D)      f32
    out_ref  : (1, tq, D)        f32   accumulated across head groups
    attn_ref : (1, hg, tq, Lk)   attention probabilities
    """
    g = pl.program_id(2)            # head-group index (innermost, "arbitrary")
    cd = compute_dtype

    q = q_ref[0]                    # (tq, D) f32
    tq, D = q.shape

    # --- LayerNorm on q (normalize_before=True); eps=1e-6 per module; f32 math ---
    mean = jnp.mean(q, axis=-1, keepdims=True)
    var = jnp.mean(jnp.square(q - mean), axis=-1, keepdims=True)
    qn = (q - mean) * jax.lax.rsqrt(var + 1e-6) * gamma_ref[0] + beta_ref[0]

    # --- Q projection for this head group: ONE dense matmul (N = hg*d_k lanes),
    # then a single split/transpose to head-major (hg, tq, d_k). ---
    qh_flat = jnp.dot(qn.astype(cd), wq_ref[0],
                      preferred_element_type=jnp.float32)        # (tq, hg*d_k)
    qh = qh_flat.astype(cd).reshape(tq, hg, d_k).transpose(1, 0, 2)

    kh = kh_ref[0]                   # (hg, Lk, d_k) cd
    vh = vh_ref[0]                   # (hg, Lk, d_v) cd

    # --- Scores / softmax for all heads of this group; scale already in Wq ---
    s = jnp.einsum('hqd,hkd->hqk', qh, kh,
                   preferred_element_type=jnp.float32)           # (hg, tq, Lk) f32
    # TODO(synk): mask=None path only; masked_fill(mask, -1e9) not implemented.
    s = s - jnp.max(s, axis=-1, keepdims=True)
    p = jnp.exp(s)
    attn = p / jnp.sum(p, axis=-1, keepdims=True)    # exact: stored rows sum to 1
    attn_ref[0] = attn.astype(attn_ref.dtype)        # one store for the whole group
    # TODO(synk): attention / output dropout are identity (eval mode).

    o = jnp.einsum('hqk,hkd->hqd', attn.astype(cd), vh,
                   preferred_element_type=jnp.float32)           # (hg, tq, d_v) f32

    # --- Output projection: unrolled per-head accumulation into one (tq, D)
    # f32 accumulator (no (H, tq, D) intermediate, no concat). ---
    fc_part = jnp.dot(o[0].astype(cd), wfc_ref[0],
                      preferred_element_type=jnp.float32)        # (tq, D)
    for h in range(1, hg):                                       # static unroll
        fc_part = fc_part + jnp.dot(o[h].astype(cd), wfc_ref[h],
                                    preferred_element_type=jnp.float32)

    # --- Accumulate across head groups; residual + fc bias added once (g==0) ---
    @pl.when(g == 0)
    def _():
        out_ref[0] = q + bfc_ref[0] + fc_part

    @pl.when(g > 0)
    def _():
        out_ref[0] = out_ref[0] + fc_part


def multi_head_attention(q, k, v, params, *, n_head, d_k, d_v,
                         compute_dtype=jnp.bfloat16, attn_dtype=None,
                         block_q=128, head_group_size=None,
                         vmem_limit_bytes=None):
    """q, k, v: (B, L, d_model) float32.  Returns (output, attn)."""
    B, Lq, D = q.shape
    Lk = k.shape[1]
    cd = jnp.dtype(compute_dtype)
    attn_dtype = cd if attn_dtype is None else jnp.dtype(attn_dtype)
    temperature = d_k ** 0.5

    hg = n_head if head_group_size is None else int(head_group_size)
    assert n_head % hg == 0, "head_group_size must divide n_head"
    n_hg = n_head // hg

    # ---- Host-side (plain XLA) parameter prep ----
    # Fold 1/sqrt(d_k) into Wq; lay it out group-major (n_hg, D, hg*d_k).
    wq_g = (params["wq"] / temperature).reshape(D, n_hg, hg * d_k)
    wq_g = wq_g.transpose(1, 0, 2).astype(cd)
    # fc weights head-major (H, d_v, D); fc bias / LN params in f32.
    wfc_h = params["wfc"].reshape(n_head, d_v, D).astype(cd)
    bfc = params["bfc"].astype(jnp.float32)
    gamma = params["gamma"].astype(jnp.float32)
    beta = params["beta"].astype(jnp.float32)

    # ---- K/V projections hoisted out of the kernel (computed once per batch) ----
    kh = (k.astype(jnp.float32) @ params["wk"]).reshape(B, Lk, n_head, d_k)
    kh = kh.transpose(0, 2, 1, 3).astype(cd)                  # (B, H, Lk, d_k)
    vh = (v.astype(jnp.float32) @ params["wv"]).reshape(B, Lk, n_head, d_v)
    vh = vh.transpose(0, 2, 1, 3).astype(cd)                  # (B, H, Lk, d_v)

    # ---- Query tiling: pad ragged Lq instead of collapsing to a single tile ----
    q32 = q.astype(jnp.float32)
    if Lq <= block_q:
        tq, Lq_pad = Lq, Lq
    else:
        tq = block_q
        Lq_pad = int(pl.cdiv(Lq, block_q)) * block_q
        if Lq_pad != Lq:
            q32 = jnp.pad(q32, ((0, 0), (0, Lq_pad - Lq), (0, 0)))
    n_q = Lq_pad // tq

    # ---- VMEM budget derived from the actual blocks (safe on v5e/v6e/v7x) ----
    if vmem_limit_bytes is None:
        def nbytes(shape, dt):
            return math.prod(shape) * jnp.dtype(dt).itemsize
        blocks = (nbytes((1, tq, D), jnp.float32)               # q tile
                  + nbytes((1, hg, Lk, d_k), cd)                # kh group
                  + nbytes((1, hg, Lk, d_v), cd)                # vh group
                  + nbytes((1, D, hg * d_k), cd)                # Wq group
                  + nbytes((hg, d_v, D), cd)                    # Wfc group
                  + 3 * nbytes((1, D), jnp.float32)             # bias / LN params
                  + nbytes((1, tq, D), jnp.float32)             # out tile
                  + nbytes((1, hg, tq, Lk), attn_dtype))        # attn tile
        live = 3 * nbytes((hg, tq, Lk), jnp.float32)            # s / p / attn temps
        vmem_limit_bytes = min(max(2 * blocks + live + (8 << 20), 32 << 20),
                               64 << 20)

    kernel = functools.partial(_mha_kernel, hg=hg, d_k=d_k, d_v=d_v,
                               compute_dtype=cd)

    out_shape = (
        jax.ShapeDtypeStruct((B, Lq_pad, D), jnp.float32),
        jax.ShapeDtypeStruct((B, n_head, Lq_pad, Lk), attn_dtype),
    )

    grid_spec = pltpu.PrefetchScalarGridSpec(
        num_scalar_prefetch=0,
        grid=(B, n_q, n_hg),       # head-group axis last -> output accumulation
        in_specs=[
            pl.BlockSpec((1, tq, D), lambda b, i, g: (b, i, 0)),            # q
            pl.BlockSpec((1, hg, Lk, d_k), lambda b, i, g: (b, g, 0, 0)),   # kh
            pl.BlockSpec((1, hg, Lk, d_v), lambda b, i, g: (b, g, 0, 0)),   # vh
            pl.BlockSpec((1, D, hg * d_k), lambda b, i, g: (g, 0, 0)),      # Wq
            pl.BlockSpec((hg, d_v, D), lambda b, i, g: (g, 0, 0)),          # Wfc
            pl.BlockSpec((1, D), lambda b, i, g: (0, 0)),                   # fc bias
            pl.BlockSpec((1, D), lambda b, i, g: (0, 0)),                   # ln gamma
            pl.BlockSpec((1, D), lambda b, i, g: (0, 0)),                   # ln beta
        ],
        out_specs=[
            pl.BlockSpec((1, tq, D), lambda b, i, g: (b, i, 0)),
            pl.BlockSpec((1, hg, tq, Lk), lambda b, i, g: (b, g, i, 0)),
        ],
    )

    out, attn = pl.pallas_call(
        kernel,
        out_shape=out_shape,
        grid_spec=grid_spec,
        compiler_params=pltpu.CompilerParams(
            dimension_semantics=("parallel", "parallel", "arbitrary"),
            vmem_limit_bytes=int(vmem_limit_bytes)),
    )(q32, kh, vh, wq_g, wfc_h, bfc, gamma, beta)

    if Lq_pad != Lq:
        out = out[:, :Lq]
        attn = attn[:, :, :Lq]
    return out, attn


def _xavier_uniform(key, fan_in, fan_out):
    bound = math.sqrt(6.0 / (fan_in + fan_out))
    return jax.random.uniform(key, (fan_in, fan_out), jnp.float32, -bound, bound)


def init_params(key, d_model, n_head, d_k, d_v):
    k1, k2, k3, k4, k5 = jax.random.split(key, 5)
    wq = _xavier_uniform(k1, d_model, n_head * d_k)
    wk = _xavier_uniform(k2, d_model, n_head * d_k)
    wv = _xavier_uniform(k3, d_model, n_head * d_v)
    wfc = _xavier_uniform(k4, n_head * d_v, d_model)
    bfc_bound = 1.0 / math.sqrt(n_head * d_v)
    bfc = jax.random.uniform(k5, (1, d_model), jnp.float32, -bfc_bound, bfc_bound)
    gamma = jnp.ones((1, d_model), jnp.float32)
    beta = jnp.zeros((1, d_model), jnp.float32)
    return dict(wq=wq, wk=wk, wv=wv, wfc=wfc, bfc=bfc, gamma=gamma, beta=beta)


def _reference(q, k, v, p, *, n_head, d_k, d_v):
    """Pure-JAX reference mirroring the PyTorch forward (eval mode)."""
    B, Lq, D = q.shape
    Lk = k.shape[1]
    mean = jnp.mean(q, axis=-1, keepdims=True)
    var = jnp.mean(jnp.square(q - mean), axis=-1, keepdims=True)
    qn = (q - mean) / jnp.sqrt(var + 1e-6) * p["gamma"][0] + p["beta"][0]
    qp = (qn @ p["wq"]).reshape(B, Lq, n_head, d_k).transpose(0, 2, 1, 3)
    kp = (k @ p["wk"]).reshape(B, Lk, n_head, d_k).transpose(0, 2, 1, 3)
    vp = (v @ p["wv"]).reshape(B, Lk, n_head, d_v).transpose(0, 2, 1, 3)
    s = jnp.einsum("bhqd,bhkd->bhqk", qp / (d_k ** 0.5), kp)
    attn = jax.nn.softmax(s, axis=-1)
    o = jnp.einsum("bhqk,bhkd->bhqd", attn, vp)
    o = o.transpose(0, 2, 1, 3).reshape(B, Lq, n_head * d_v)
    out = o @ p["wfc"] + p["bfc"][0] + q
    return out, attn


if __name__ == "__main__":
    # Small, deterministic shapes.  Head dims are chosen lane-aligned (128),
    # the typical TPU-friendly head size; everything else stays tiny.
    B, L, d_model = 2, 8, 64
    n_head, d_k, d_v = 4, 128, 128

    key = jax.random.PRNGKey(0)
    kq, kk, kv, kp = jax.random.split(key, 4)
    q = jax.random.normal(kq, (B, L, d_model), jnp.float32)
    k = jax.random.normal(kk, (B, L, d_model), jnp.float32)
    v = jax.random.normal(kv, (B, L, d_model), jnp.float32)
    params = init_params(kp, d_model, n_head, d_k, d_v)

    ref_out, ref_attn = _reference(q, k, v, params,
                                   n_head=n_head, d_k=d_k, d_v=d_v)

    # f32 compute path, single head group: tight numerical check.
    out32, attn32 = multi_head_attention(q, k, v, params, n_head=n_head,
                                         d_k=d_k, d_v=d_v,
                                         compute_dtype=jnp.float32,
                                         attn_dtype=jnp.float32)
    jax.block_until_ready((out32, attn32))
    assert jnp.allclose(out32, ref_out, atol=1e-4, rtol=1e-4), "f32 output mismatch"
    assert jnp.allclose(attn32, ref_attn, atol=1e-4, rtol=1e-4), "f32 attn mismatch"

    # Default bf16 MXU-operand path with two head groups (exercises the
    # head-group grid axis and the cross-group output accumulation).
    out_bf, attn_bf = multi_head_attention(q, k, v, params, n_head=n_head,
                                           d_k=d_k, d_v=d_v,
                                           compute_dtype=jnp.bfloat16,
                                           head_group_size=2)
    jax.block_until_ready((out_bf, attn_bf))
    assert jnp.allclose(out_bf, ref_out, atol=1e-1, rtol=1e-1), "bf16 output mismatch"
    assert jnp.allclose(attn_bf.astype(jnp.float32), ref_attn,
                        atol=5e-2, rtol=5e-2), "bf16 attn mismatch"

    print("KERNEL_OK")
</pallas_src>

<mosaic_0001>
module attributes {stable_mosaic.version = 11 : i64} {
  func.func @_mha_kernel(%arg0: i32, %arg1: i32, %arg2: i32, %arg3: memref<1x8x64xf32, #tpu.memory_space<vmem>>, %arg4: memref<1x4x8x128xf32, #tpu.memory_space<vmem>>, %arg5: memref<1x4x8x128xf32, #tpu.memory_space<vmem>>, %arg6: memref<1x64x512xf32, #tpu.memory_space<vmem>>, %arg7: memref<4x128x64xf32, #tpu.memory_space<vmem>>, %arg8: memref<1x64xf32, #tpu.memory_space<vmem>>, %arg9: memref<1x64xf32, #tpu.memory_space<vmem>>, %arg10: memref<1x64xf32, #tpu.memory_space<vmem>>, %arg11: memref<1x8x64xf32, #tpu.memory_space<vmem>>, %arg12: memref<1x4x8x8xf32, #tpu.memory_space<vmem>>) attributes {dimension_semantics = [#tpu.dimension_semantics<parallel>, #tpu.dimension_semantics<parallel>, #tpu.dimension_semantics<arbitrary>], iteration_bounds = array<i64: 2, 1, 1>, scalar_prefetch = 0 : i64, scratch_operands = 0 : i64, tpu.core_type = #tpu.core_type<tc>, window_params = [{transform_indices = @transform_0, window_bounds = array<i64: 1, 8, 64>}, {transform_indices = @transform_1, window_bounds = array<i64: 1, 4, 8, 128>}, {transform_indices = @transform_2, window_bounds = array<i64: 1, 4, 8, 128>}, {transform_indices = @transform_3, window_bounds = array<i64: 1, 64, 512>}, {transform_indices = @transform_4, window_bounds = array<i64: 4, 128, 64>}, {pipeline_mode = #tpu.pipeline_mode<synchronous>, transform_indices = @transform_5, window_bounds = array<i64: 1, 64>}, {pipeline_mode = #tpu.pipeline_mode<synchronous>, transform_indices = @transform_6, window_bounds = array<i64: 1, 64>}, {pipeline_mode = #tpu.pipeline_mode<synchronous>, transform_indices = @transform_7, window_bounds = array<i64: 1, 64>}, {transform_indices = @transform_8, window_bounds = array<i64: 1, 8, 64>}, {transform_indices = @transform_9, window_bounds = array<i64: 1, 4, 8, 8>}]} {
    %c0 = arith.constant 0 : index
    %c0_0 = arith.constant 0 : index
    %c0_1 = arith.constant 0 : index
    %0 = vector.load %arg3[%c0, %c0_0, %c0_1] : memref<1x8x64xf32, #tpu.memory_space<vmem>>, vector<1x8x64xf32>
    %1 = vector.shape_cast %0 : vector<1x8x64xf32> to vector<8x64xf32>
    %cst = arith.constant dense<0.000000e+00> : vector<8xf32>
    %2 = vector.multi_reduction <add>, %1, %cst [1] : vector<8x64xf32> to vector<8xf32>
    %3 = vector.shape_cast %2 : vector<8xf32> to vector<8x1xf32>
    %cst_2 = arith.constant 6.400000e+01 : f32
    %4 = vector.broadcast %cst_2 : f32 to vector<8x1xf32>
    %5 = arith.divf %3, %4 : vector<8x1xf32>
    %6 = vector.broadcast %5 : vector<8x1xf32> to vector<8x64xf32>
    %7 = arith.subf %1, %6 : vector<8x64xf32>
    %8 = arith.mulf %7, %7 : vector<8x64xf32>
    %cst_3 = arith.constant dense<0.000000e+00> : vector<8xf32>
    %9 = vector.multi_reduction <add>, %8, %cst_3 [1] : vector<8x64xf32> to vector<8xf32>
    %10 = vector.shape_cast %9 : vector<8xf32> to vector<8x1xf32>
    %cst_4 = arith.constant 6.400000e+01 : f32
    %11 = vector.broadcast %cst_4 : f32 to vector<8x1xf32>
    %12 = arith.divf %10, %11 : vector<8x1xf32>
    %13 = vector.broadcast %5 : vector<8x1xf32> to vector<8x64xf32>
    %14 = arith.subf %1, %13 : vector<8x64xf32>
    %cst_5 = arith.constant 9.99999997E-7 : f32
    %15 = vector.broadcast %cst_5 : f32 to vector<8x1xf32>
    %16 = arith.addf %12, %15 : vector<8x1xf32>
    %17 = math.rsqrt %16 : vector<8x1xf32>
    %18 = vector.broadcast %17 : vector<8x1xf32> to vector<8x64xf32>
    %19 = arith.mulf %14, %18 : vector<8x64xf32>
    %c0_6 = arith.constant 0 : index
    %c0_7 = arith.constant 0 : index
    %20 = vector.load %arg9[%c0_6, %c0_7] : memref<1x64xf32, #tpu.memory_space<vmem>>, vector<1x64xf32>
    %21 = vector.shape_cast %20 : vector<1x64xf32> to vector<64xf32>
    %22 = vector.shape_cast %21 : vector<64xf32> to vector<1x64xf32>
    %23 = vector.broadcast %22 : vector<1x64xf32> to vector<8x64xf32>
    %24 = arith.mulf %19, %23 : vector<8x64xf32>
    %c0_8 = arith.constant 0 : index
    %c0_9 = arith.constant 0 : index
    %25 = vector.load %arg10[%c0_8, %c0_9] : memref<1x64xf32, #tpu.memory_space<vmem>>, vector<1x64xf32>
    %26 = vector.shape_cast %25 : vector<1x64xf32> to vector<64xf32>
    %27 = vector.shape_cast %26 : vector<64xf32> to vector<1x64xf32>
    %28 = vector.broadcast %27 : vector<1x64xf32> to vector<8x64xf32>
    %29 = arith.addf %24, %28 : vector<8x64xf32>
    %c0_10 = arith.constant 0 : index
    %c0_11 = arith.constant 0 : index
    %c0_12 = arith.constant 0 : index
    %30 = vector.load %arg6[%c0_10, %c0_11, %c0_12] : memref<1x64x512xf32, #tpu.memory_space<vmem>>, vector<1x64x512xf32>
    %31 = vector.shape_cast %30 : vector<1x64x512xf32> to vector<64x512xf32>
    %cst_13 = arith.constant dense<0.000000e+00> : vector<8x512xf32>
    %32 = tpu.matmul %29, %31, %cst_13 {dimension_numbers = #tpu.dot_dimension_numbers<[1], [0], [0], [1], [0, 0, 1, 1], [], []>} : vector<8x64xf32>, vector<64x512xf32>, vector<8x512xf32> -> vector<8x512xf32>
    %33 = vector.shape_cast %32 : vector<8x512xf32> to vector<8x4x128xf32>
    %34 = tpu.transpose %33, [1, 0, 2] : vector<8x4x128xf32> -> vector<4x8x128xf32>
    %c0_14 = arith.constant 0 : index
    %c0_15 = arith.constant 0 : index
    %c0_16 = arith.constant 0 : index
    %c0_17 = arith.constant 0 : index
    %35 = vector.load %arg4[%c0_14, %c0_15, %c0_16, %c0_17] : memref<1x4x8x128xf32, #tpu.memory_space<vmem>>, vector<1x4x8x128xf32>
    %36 = vector.shape_cast %35 : vector<1x4x8x128xf32> to vector<4x8x128xf32>
    %c0_18 = arith.constant 0 : index
    %c0_19 = arith.constant 0 : index
    %c0_20 = arith.constant 0 : index
    %c0_21 = arith.constant 0 : index
    %37 = vector.load %arg5[%c0_18, %c0_19, %c0_20, %c0_21] : memref<1x4x8x128xf32, #tpu.memory_space<vmem>>, vector<1x4x8x128xf32>
    %38 = vector.shape_cast %37 : vector<1x4x8x128xf32> to vector<4x8x128xf32>
    "tpu.trace_start"() <{level = 10 : i32, message = "hqd,hkd->hqk"}> : () -> ()
    %cst_22 = arith.constant dense<0.000000e+00> : vector<4x8x8xf32>
    %39 = tpu.matmul %34, %36, %cst_22 {dimension_numbers = #tpu.dot_dimension_numbers<[2], [2], [1], [1], [0, 0, 0, 1, 1, 1], [0], [0]>} : vector<4x8x128xf32>, vector<4x8x128xf32>, vector<4x8x8xf32> -> vector<4x8x8xf32>
    "tpu.trace_stop"() : () -> ()
    %cst_23 = arith.constant dense<0xFF800000> : vector<4x8xf32>
    %40 = vector.multi_reduction <maximumf>, %39, %cst_23 [2] : vector<4x8x8xf32> to vector<4x8xf32>
    %41 = vector.shape_cast %40 : vector<4x8xf32> to vector<4x8x1xf32>
    %42 = vector.broadcast %41 : vector<4x8x1xf32> to vector<4x8x8xf32>
    %43 = arith.subf %39, %42 : vector<4x8x8xf32>
    %44 = math.exp %43 : vector<4x8x8xf32>
    %cst_24 = arith.constant dense<0.000000e+00> : vector<4x8xf32>
    %45 = vector.multi_reduction <add>, %44, %cst_24 [2] : vector<4x8x8xf32> to vector<4x8xf32>
    %46 = vector.shape_cast %45 : vector<4x8xf32> to vector<4x8x1xf32>
    %47 = vector.broadcast %46 : vector<4x8x1xf32> to vector<4x8x8xf32>
    %48 = arith.divf %44, %47 : vector<4x8x8xf32>
    %c0_25 = arith.constant 0 : index
    %c0_26 = arith.constant 0 : index
    %c0_27 = arith.constant 0 : index
    %c0_28 = arith.constant 0 : index
    %49 = vector.load %arg12[%c0_25, %c0_26, %c0_27, %c0_28] : memref<1x4x8x8xf32, #tpu.memory_space<vmem>>, vector<1x4x8x8xf32>
    %50 = vector.shape_cast %49 : vector<1x4x8x8xf32> to vector<4x8x8xf32>
    %51 = vector.shape_cast %48 : vector<4x8x8xf32> to vector<1x4x8x8xf32>
    tpu.vector_store %arg12[%c0_25, %c0_26, %c0_27, %c0_28], %51 {strides = array<i32>} : memref<1x4x8x8xf32, #tpu.memory_space<vmem>>, vector<1x4x8x8xf32>,
    "tpu.trace_start"() <{level = 10 : i32, message = "hqk,hkd->hqd"}> : () -> ()
    %cst_29 = arith.constant dense<0.000000e+00> : vector<4x8x128xf32>
    %52 = tpu.matmul %48, %38, %cst_29 {dimension_numbers = #tpu.dot_dimension_numbers<[2], [1], [1], [2], [0, 0, 0, 1, 1, 2], [0], [0]>} : vector<4x8x8xf32>, vector<4x8x128xf32>, vector<4x8x128xf32> -> vector<4x8x128xf32>
    "tpu.trace_stop"() : () -> ()
    %53 = vector.extract_strided_slice %52 {offsets = [0, 0, 0], sizes = [1, 8, 128], strides = [1, 1, 1]} : vector<4x8x128xf32> to vector<1x8x128xf32>
    %54 = vector.shape_cast %53 : vector<1x8x128xf32> to vector<8x128xf32>
    %c0_30 = arith.constant 0 : index
    %c0_31 = arith.constant 0 : index
    %c0_32 = arith.constant 0 : index
    %55 = vector.load %arg7[%c0_30, %c0_31, %c0_32] : memref<4x128x64xf32, #tpu.memory_space<vmem>>, vector<1x128x64xf32>
    %56 = vector.shape_cast %55 : vector<1x128x64xf32> to vector<128x64xf32>
    %cst_33 = arith.constant dense<0.000000e+00> : vector<8x64xf32>
    %57 = tpu.matmul %54, %56, %cst_33 {dimension_numbers = #tpu.dot_dimension_numbers<[1], [0], [0], [1], [0, 0, 1, 1], [], []>} : vector<8x128xf32>, vector<128x64xf32>, vector<8x64xf32> -> vector<8x64xf32>
    %58 = vector.extract_strided_slice %52 {offsets = [1, 0, 0], sizes = [1, 8, 128], strides = [1, 1, 1]} : vector<4x8x128xf32> to vector<1x8x128xf32>
    %59 = vector.shape_cast %58 : vector<1x8x128xf32> to vector<8x128xf32>
    %c1 = arith.constant 1 : index
    %c0_34 = arith.constant 0 : index
    %c0_35 = arith.constant 0 : index
    %60 = vector.load %arg7[%c1, %c0_34, %c0_35] : memref<4x128x64xf32, #tpu.memory_space<vmem>>, vector<1x128x64xf32>
    %61 = vector.shape_cast %60 : vector<1x128x64xf32> to vector<128x64xf32>
    %cst_36 = arith.constant dense<0.000000e+00> : vector<8x64xf32>
    %62 = tpu.matmul %59, %61, %cst_36 {dimension_numbers = #tpu.dot_dimension_numbers<[1], [0], [0], [1], [0, 0, 1, 1], [], []>} : vector<8x128xf32>, vector<128x64xf32>, vector<8x64xf32> -> vector<8x64xf32>
    %63 = arith.addf %57, %62 : vector<8x64xf32>
    %64 = vector.extract_strided_slice %52 {offsets = [2, 0, 0], sizes = [1, 8, 128], strides = [1, 1, 1]} : vector<4x8x128xf32> to vector<1x8x128xf32>
    %65 = vector.shape_cast %64 : vector<1x8x128xf32> to vector<8x128xf32>
    %c2 = arith.constant 2 : index
    %c0_37 = arith.constant 0 : index
    %c0_38 = arith.constant 0 : index
    %66 = vector.load %arg7[%c2, %c0_37, %c0_38] : memref<4x128x64xf32, #tpu.memory_space<vmem>>, vector<1x128x64xf32>
    %67 = vector.shape_cast %66 : vector<1x128x64xf32> to vector<128x64xf32>
    %cst_39 = arith.constant dense<0.000000e+00> : vector<8x64xf32>
    %68 = tpu.matmul %65, %67, %cst_39 {dimension_numbers = #tpu.dot_dimension_numbers<[1], [0], [0], [1], [0, 0, 1, 1], [], []>} : vector<8x128xf32>, vector<128x64xf32>, vector<8x64xf32> -> vector<8x64xf32>
    %69 = arith.addf %63, %68 : vector<8x64xf32>
    %70 = vector.extract_strided_slice %52 {offsets = [3, 0, 0], sizes = [1, 8, 128], strides = [1, 1, 1]} : vector<4x8x128xf32> to vector<1x8x128xf32>
    %71 = vector.shape_cast %70 : vector<1x8x128xf32> to vector<8x128xf32>
    %c3 = arith.constant 3 : index
    %c0_40 = arith.constant 0 : index
    %c0_41 = arith.constant 0 : index
    %72 = vector.load %arg7[%c3, %c0_40, %c0_41] : memref<4x128x64xf32, #tpu.memory_space<vmem>>, vector<1x128x64xf32>
    %73 = vector.shape_cast %72 : vector<1x128x64xf32> to vector<128x64xf32>
    %cst_42 = arith.constant dense<0.000000e+00> : vector<8x64xf32>
    %74 = tpu.matmul %71, %73, %cst_42 {dimension_numbers = #tpu.dot_dimension_numbers<[1], [0], [0], [1], [0, 0, 1, 1], [], []>} : vector<8x128xf32>, vector<128x64xf32>, vector<8x64xf32> -> vector<8x64xf32>
    %75 = arith.addf %69, %74 : vector<8x64xf32>
    %c0_i32 = arith.constant 0 : i32
    %76 = arith.cmpi eq, %arg2, %c0_i32 : i32
    %77 = arith.extui %76 : i1 to i32
    %c0_i32_43 = arith.constant 0 : i32
    %78 = arith.cmpi ne, %77, %c0_i32_43 : i32
    scf.if %78 {
      %c0_46 = arith.constant 0 : index
      %c0_47 = arith.constant 0 : index
      %82 = vector.load %arg8[%c0_46, %c0_47] : memref<1x64xf32, #tpu.memory_space<vmem>>, vector<1x64xf32>
      %83 = vector.shape_cast %82 : vector<1x64xf32> to vector<64xf32>
      %84 = vector.shape_cast %83 : vector<64xf32> to vector<1x64xf32>
      %85 = vector.broadcast %84 : vector<1x64xf32> to vector<8x64xf32>
      %86 = arith.addf %1, %85 : vector<8x64xf32>
      %87 = arith.addf %86, %75 : vector<8x64xf32>
      %c0_48 = arith.constant 0 : index
      %c0_49 = arith.constant 0 : index
      %c0_50 = arith.constant 0 : index
      %88 = vector.load %arg11[%c0_48, %c0_49, %c0_50] : memref<1x8x64xf32, #tpu.memory_space<vmem>>, vector<1x8x64xf32>
      %89 = vector.shape_cast %88 : vector<1x8x64xf32> to vector<8x64xf32>
      %90 = vector.shape_cast %87 : vector<8x64xf32> to vector<1x8x64xf32>
      tpu.vector_store %arg11[%c0_48, %c0_49, %c0_50], %90 {strides = array<i32>} : memref<1x8x64xf32, #tpu.memory_space<vmem>>, vector<1x8x64xf32>,
    } else {
    }
    %c0_i32_44 = arith.constant 0 : i32
    %79 = arith.cmpi sgt, %arg2, %c0_i32_44 : i32
    %80 = arith.extui %79 : i1 to i32
    %c0_i32_45 = arith.constant 0 : i32
    %81 = arith.cmpi ne, %80, %c0_i32_45 : i32
    scf.if %81 {
      %c0_46 = arith.constant 0 : index
      %c0_47 = arith.constant 0 : index
      %c0_48 = arith.constant 0 : index
      %82 = vector.load %arg11[%c0_46, %c0_47, %c0_48] : memref<1x8x64xf32, #tpu.memory_space<vmem>>, vector<1x8x64xf32>
      %83 = vector.shape_cast %82 : vector<1x8x64xf32> to vector<8x64xf32>
      %84 = arith.addf %83, %75 : vector<8x64xf32>
      %c0_49 = arith.constant 0 : index
      %c0_50 = arith.constant 0 : index
      %c0_51 = arith.constant 0 : index
      %85 = vector.load %arg11[%c0_49, %c0_50, %c0_51] : memref<1x8x64xf32, #tpu.memory_space<vmem>>, vector<1x8x64xf32>
      %86 = vector.shape_cast %85 : vector<1x8x64xf32> to vector<8x64xf32>
      %87 = vector.shape_cast %84 : vector<8x64xf32> to vector<1x8x64xf32>
      tpu.vector_store %arg11[%c0_49, %c0_50, %c0_51], %87 {strides = array<i32>} : memref<1x8x64xf32, #tpu.memory_space<vmem>>, vector<1x8x64xf32>,
    } else {
    }
    return
  }
  func.func @transform_0(%arg0: i32, %arg1: i32, %arg2: i32) -> (i32, i32, i32) {
    %c0_i32 = arith.constant 0 : i32
    %c0_i32_0 = arith.constant 0 : i32
    return %arg0, %arg1, %c0_i32 : i32, i32, i32
  }
  func.func @transform_1(%arg0: i32, %arg1: i32, %arg2: i32) -> (i32, i32, i32, i32) {
    %c0_i32 = arith.constant 0 : i32
    %c0_i32_0 = arith.constant 0 : i32
    %c0_i32_1 = arith.constant 0 : i32
    return %arg0, %arg2, %c0_i32, %c0_i32_0 : i32, i32, i32, i32
  }
  func.func @transform_2(%arg0: i32, %arg1: i32, %arg2: i32) -> (i32, i32, i32, i32) {
    %c0_i32 = arith.constant 0 : i32
    %c0_i32_0 = arith.constant 0 : i32
    %c0_i32_1 = arith.constant 0 : i32
    return %arg0, %arg2, %c0_i32, %c0_i32_0 : i32, i32, i32, i32
  }
  func.func @transform_3(%arg0: i32, %arg1: i32, %arg2: i32) -> (i32, i32, i32) {
    %c0_i32 = arith.constant 0 : i32
    %c0_i32_0 = arith.constant 0 : i32
    %c0_i32_1 = arith.constant 0 : i32
    return %arg2, %c0_i32, %c0_i32_0 : i32, i32, i32
  }
  func.func @transform_4(%arg0: i32, %arg1: i32, %arg2: i32) -> (i32, i32, i32) {
    %c0_i32 = arith.constant 0 : i32
    %c0_i32_0 = arith.constant 0 : i32
    %c0_i32_1 = arith.constant 0 : i32
    return %arg2, %c0_i32, %c0_i32_0 : i32, i32, i32
  }
  func.func @transform_5(%arg0: i32, %arg1: i32, %arg2: i32) -> (i32, i32) {
    %c0_i32 = arith.constant 0 : i32
    %c0_i32_0 = arith.constant 0 : i32
    %c0_i32_1 = arith.constant 0 : i32
    return %c0_i32, %c0_i32_0 : i32, i32
  }
  func.func @transform_6(%arg0: i32, %arg1: i32, %arg2: i32) -> (i32, i32) {
    %c0_i32 = arith.constant 0 : i32
    %c0_i32_0 = arith.constant 0 : i32
    %c0_i32_1 = arith.constant 0 : i32
    return %c0_i32, %c0_i32_0 : i32, i32
  }
  func.func @transform_7(%arg0: i32, %arg1: i32, %arg2: i32) -> (i32, i32) {
    %c0_i32 = arith.constant 0 : i32
    %c0_i32_0 = arith.constant 0 : i32
    %c0_i32_1 = arith.constant 0 : i32
    return %c0_i32, %c0_i32_0 : i32, i32
  }
  func.func @transform_8(%arg0: i32, %arg1: i32, %arg2: i32) -> (i32, i32, i32) {
    %c0_i32 = arith.constant 0 : i32
    %c0_i32_0 = arith.constant 0 : i32
    return %arg0, %arg1, %c0_i32 : i32, i32, i32
  }
  func.func @transform_9(%arg0: i32, %arg1: i32, %arg2: i32) -> (i32, i32, i32, i32) {
    %c0_i32 = arith.constant 0 : i32
    %c0_i32_0 = arith.constant 0 : i32
    return %arg0, %arg2, %arg1, %c0_i32 : i32, i32, i32, i32
  }
}

</mosaic_0001>

<bundles_post_ra>
// kernel: tpu_custom_call.1
= control target key start
LH: loop header
LB: loop body
LE: loop exit
PB: predicated region body
PF: predicated region fallthrough
CT: control target
= control target key end

     0   :  { %s3353_s0 = inlined_call_operand.vmem [shape: f32[2,8,64], index: 0, kind: input, shape index: {}]   ;;  %s3354_s1 = inlined_call_operand.vmem [shape: f32[2,4,8,128], index: 1, kind: input, shape index: {}]   ;;  %s3355_s2 = inlined_call_operand.vmem [shape: f32[2,4,8,128], index: 2, kind: input, shape index: {}]   ;;  %s3356_s3 = inlined_call_operand.vmem [shape: f32[1,64,512], index: 3, kind: input, shape index: {}]   ;;  %s3357_s4 = inlined_call_operand.vmem [shape: f32[4,128,64], index: 4, kind: input, shape index: {}]   ;;  %s3358_s5 = inlined_call_operand.vmem [shape: f32[1,64], index: 5, kind: input, shape index: {}]   ;;  %s3359_s6 = inlined_call_operand.vmem [shape: f32[1,64], index: 6, kind: input, shape index: {}]   ;;  %s3360_s7 = inlined_call_operand.vmem [shape: f32[1,64], index: 7, kind: input, shape index: {}]   ;;  %s3361_s8 = inlined_call_operand.hbm [shape: f32[2,8,64], index: 8, kind: output, shape index: {0}]   ;;  %s3362_s9 = inlined_call_operand.hbm [shape: f32[2,4,8,8], index: 9, kind: output, shape index: {1}]  }
   0x1   :  { %3363 = sst [smem:[#allocation8_spill]] %s3353_s0 }
   0x2   :  { %3364 = sst [smem:[#allocation9_spill]] %s3354_s1 }
   0x3   :  { %15 = vsyncpa [#allocation3], 0 }
   0x4   :  { %17 = vsyncpa [#allocation3 + $0x1], 0 }
   0x5   :  { %18 = vsyncpa [#allocation5], 0 }
   0x6   :  { %20 = vsyncpa [#allocation5 + $0x1], 0  ;;  %s2783_s30 = smov 0   ;;  %s2785_s10 = smov 0  }
   0x7   :  { %s2787_s11 = smov 0   ;;  %s2789_s12 = smov 0  }
   0x8   :  { %s2791_s13 = smov 0   ;;  %s2793_s14 = smov 0  }
   0x9 LB: > { %s2052_s15 = sadd.s32 4294967295, %s2722_s14   ;;  %s2053_s16 = sadd.s32 4294967294, %s2722_s14   ;;  %s2722_s14 = sphi %s2793_s14, %s26_s14   ;;  %s2718_s13 = sphi %s2791_s13, %s3373_s13   ;;  %s2714_s12 = sphi %s2789_s12, %s3372_s12   ;;  %s2710_s11 = sphi %s2787_s11, %s3371_s11   ;;  %s2706_s10 = sphi %s2785_s10, %s3370_s10   ;;  %s2702_s30 = sphi %s2783_s30, %s3369_s30  }
   0xa   : > { %s45_s17 = sadd.s32 1, %s2718_s13  ;;  %s253_s18 = sadd.s32 1, %s2710_s11 }
   0xb   : > { %p47_p0 = scmp.ge.s32.totalorder %s45_s17, 2  ;;  %p263_p1 = scmp.ne.s32.totalorder %s2710_s11, %s2706_s10 }
   0xc   : > { %p264_p2 = scmp.eq.s32.totalorder %s2052_s15, 1  ;;  %p269_p3 = scmp.ne.s32.totalorder %s2706_s10, %s2702_s30 }
   0xd   : > { %s3375_s17 = smov (%p47_p0, %s45_s17), 0  ;;  %p270_p5 = scmp.eq.s32.totalorder %s2053_s16, 1 }
   0xe   : > { %p2823_p4 = por %p264_p2, %p263_p1  ;;  %s248_s20 = ssub.s32 %s2718_s13, %s3375_s17 }
   0xf   : > { %p2058_p6 = scmp.ge.s32.totalorder %s2722_s14, 1  ;;  %p251_p7 = scmp.eq.s32.totalorder %s248_s20, 0 }
  0x10   : > { %p2830_p8 = por %p270_p5, %p269_p3  ;;  %p381_p9 = scmp.lt.s32.totalorder %s2722_s14, 3 }
  0x11   : > { %s2836_s22 = scalar_select %p251_p7, %s2710_s11, %s253_s18  }
  0x12   : > { %p382_p10 = pnand %p2058_p6, %p381_p9 }
  0x13   : > { %p453_p11 = scmp.lt.s32.totalorder (!%p382_p10), %s2714_s12, 1  ;;  %vm494_vm0 = vcmask (!%p382_p10), 523264   ;;  %s3367_s0 = sld [smem:[#allocation8_spill]] (!%p382_p10)  ;;  %v526_v7 = vld [vmem:[%s3356_s3 + $0x8] sm:$0xff] (!%p382_p10)  ;;  %v528_v9 = vld [vmem:[%s3356_s3 + $0x18] sm:$0xff] (!%p382_p10)  ;;  %v525_v12 = vld [vmem:[%s3356_s3] sm:$0xff] (!%p382_p10) }
  0x14   : > { %385 = sbr.rel (%p382_p10) target bundleno = 1580 (0x62c), region = 52  ;;  %v530_v8 = vld [vmem:[%s3356_s3 + $0x28] sm:$0xff] (!%p382_p10)  ;;  %v532_v11 = vld [vmem:[%s3356_s3 + $0x38] sm:$0xff] (!%p382_p10)  ;;  %v529_v13 = vld [vmem:[%s3356_s3 + $0x20] sm:$0xff] (!%p382_p10)  ;;  %v2724_v23 = vmov (!%p382_p10), 0.0   ;;  %s3368_s1 = sld [smem:[#allocation9_spill]] (!%p382_p10) }
  0x15   : > { %v2399_v10 = vpack.c.bf16 (!%p382_p10), %v530_v8, %v526_v7  ;;  %v2415_v14 = vpack.c.bf16 (!%p382_p10), %v532_v11, %v528_v9  ;;  %v2401_v15 = vpack.c.bf16 (!%p382_p10), %v529_v13, %v525_v12  ;;  %v527_v16 = vld [vmem:[%s3356_s3 + $0x10] sm:$0xff] (!%p382_p10)  ;;  %v534_v18 = vld [vmem:[%s3356_s3 + $0x48] sm:$0xff] (!%p382_p10)  ;;  %v536_v21 = vld [vmem:[%s3356_s3 + $0x58] sm:$0xff] (!%p382_p10)  ;;  %624 = vmatprep.mubr.f32.mxu0 (!%p382_p10), %v2724_v23  ;;  %695 = vmatprep.mubr.f32.mxu1 (!%p382_p10), %v2724_v23  ;;  %vm2725_vm1 = vmmov (!%p382_p10), 0   ;;  %s2134_s16 = sshll.u32 (!%p382_p10), %s2714_s12, 9 }
  0x16   : > { %v531_v17 = vld [vmem:[%s3356_s3 + $0x30] sm:$0xff] (!%p382_p10)  ;;  %v538_v20 = vld [vmem:[%s3356_s3 + $0x68] sm:$0xff] (!%p382_p10)  ;;  %v540_v22 = vld [vmem:[%s3356_s3 + $0x78] sm:$0xff] (!%p382_p10)  ;;  %v2727_v9 = vmov (!%p382_p10), 1934713408   ;;  %vm1126_vm2 = vcmask (!%p382_p10), 64512  }
  0x17   : > { %2400 = vmatprep.subr.bf16.mxu0 (!%p382_p10), %v2399_v10  ;;  %v2417_v19 = vpack.c.bf16 (!%p382_p10), %v531_v17, %v527_v16  ;;  %2416 = vmatprep.subr.bf16.mxu1 (!%p382_p10), %v2415_v14  ;;  %v2403_v24 = vpack.c.bf16 (!%p382_p10), %v538_v20, %v534_v18  ;;  %v2419_v25 = vpack.c.bf16 (!%p382_p10), %v540_v22, %v536_v21  ;;  %v533_v26 = vld [vmem:[%s3356_s3 + $0x40] sm:$0xff] (!%p382_p10)  ;;  %v535_v28 = vld [vmem:[%s3356_s3 + $0x50] sm:$0xff] (!%p382_p10)  ;;  %v542_v31 = vld [vmem:[%s3356_s3 + $0x88] sm:$0xff] (!%p382_p10)  ;;  %v737_v10 = vunpack.c.l.s4 (!%p382_p10), %v2727_v9 }
  0x18   : > { %2402 = vmatpush1.bf16.msra.mxu0 (!%p382_p10), %v2401_v15  ;;  %v537_v27 = vld [vmem:[%s3356_s3 + $0x60] sm:$0xff] (!%p382_p10)  ;;  %v539_v30 = vld [vmem:[%s3356_s3 + $0x70] sm:$0xff] (!%p382_p10)  ;;  %v546_v32 = vld [vmem:[%s3356_s3 + $0xa8] sm:$0xff] (!%p382_p10) }
  0x19   : > { %2418 = vmatpush1.bf16.msra.mxu1 (!%p382_p10), %v2417_v19  ;;  %v2405_v29 = vpack.c.bf16 (!%p382_p10), %v537_v27, %v533_v26  ;;  %2404 = vmatprep.subr.bf16.mxu0 (!%p382_p10), %v2403_v24  ;;  %v2421_v33 = vpack.c.bf16 (!%p382_p10), %v539_v30, %v535_v28  ;;  %v2407_v34 = vpack.c.bf16 (!%p382_p10), %v546_v32, %v542_v31  ;;  %v544_v35 = vld [vmem:[%s3356_s3 + $0x98] sm:$0xff] (!%p382_p10)  ;;  %v541_v37 = vld [vmem:[%s3356_s3 + $0x80] sm:$0xff] (!%p382_p10)  ;;  %v543_v40 = vld [vmem:[%s3356_s3 + $0x90] sm:$0xff] (!%p382_p10)  ;;  %v738_v14 = vunpack.c.0.s8 (!%p382_p10), %v737_v10 }
  0x1a   : > { %2420 = vmatprep.subr.bf16.mxu1 (!%p382_p10), %v2419_v25  ;;  %v548_v36 = vld [vmem:[%s3356_s3 + $0xb8] sm:$0xff] (!%p382_p10)  ;;  %v545_v39 = vld [vmem:[%s3356_s3 + $0xa0] sm:$0xff] (!%p382_p10)  ;;  %v547_v41 = vld [vmem:[%s3356_s3 + $0xb0] sm:$0xff] (!%p382_p10) }
  0x1b   : > { %s2840_s23 = scalar_select %p453_p11, %s2714_s12, 1  ;;  %v2423_v38 = vpack.c.bf16 %v548_v36, %v544_v35  ;;  %v2409_v42 = vpack.c.bf16 %v545_v39, %v541_v37  ;;  %v550_v43 = vld [vmem:[%s3356_s3 + $0xc8] sm:$0xff]  ;;  %v552_v45 = vld [vmem:[%s3356_s3 + $0xd8] sm:$0xff]  ;;  %v2425_v46 = vpack.c.bf16 %v547_v41, %v543_v40  ;;  %v549_v49 = vld [vmem:[%s3356_s3 + $0xc0] sm:$0xff] }
  0x1c   : > { %2406 = vmatpush1.bf16.msra.mxu0 %v2405_v29  ;;  %v554_v44 = vld [vmem:[%s3356_s3 + $0xe8] sm:$0xff]  ;;  %v556_v48 = vld [vmem:[%s3356_s3 + $0xf8] sm:$0xff]  ;;  %v553_v50 = vld [vmem:[%s3356_s3 + $0xe0] sm:$0xff] }
  0x1d   : > { %s2061_s24 = sshll.u32 %s2840_s23, 3  ;;  %2422 = vmatpush1.bf16.msra.mxu1 %v2421_v33  ;;  %2408 = vmatprep.subr.bf16.mxu0 %v2407_v34  ;;  %v2411_v47 = vpack.c.bf16 %v554_v44, %v550_v43  ;;  %v2427_v51 = vpack.c.bf16 %v556_v48, %v552_v45  ;;  %v551_v52 = vld [vmem:[%s3356_s3 + $0xd0] sm:$0xff]  ;;  %v2413_v54 = vpack.c.bf16 %v553_v50, %v549_v49  ;;  %v2066_v60 = vld [vmem:[%s3359_s6] ss:$0 sm:$0xff]  ;;  %s2132_s15 = sshll.u32 %s2840_s23, 5 }
  0x1e   : > { %s459_s27 = scalar_lea.vmem %s3367_s0, %s2061_s24  ;;  %2424 = vmatprep.subr.bf16.mxu1 %v2423_v38  ;;  %v555_v53 = vld [vmem:[%s3356_s3 + $0xf0] sm:$0xff]  ;;  %v2067_v62 = vld [vmem:[%s3360_s7] ss:$0 sm:$0xff]  ;;  %s2971_s20 = scalar_lea.vmem %s3368_s1, %s2132_s15 }
  0x1f   : > { %v2846_v0 = vld [vmem:[%s459_s27] sm:$0xff]  ;;  %v2429_v55 = vpack.c.bf16 %v555_v53, %v551_v52  ;;  %v840_v53 = vld [vmem:[%s2971_s20 + $0x10] sm:$0xff]  ;;  %s478_s26 = scalar_lea.vmem %s3355_s2, %s2132_s15  ;;  %s3009_s0 = sand.u32 1, %s2706_s10  }
  0x20   : > { %v495_v1 = vsel %vm494_vm0, %v2846_v0, 0.0  ;;  %2410 = vmatpush1.bf16.msra.mxu0 %v2409_v42  ;;  %s2060_s23 = sshll.u32 %s3009_s0, 5  ;;  %s3269_s24 = scalar_lea.hbm %s3362_s9, %s2134_s16 }
  0x21   : > { %496 = vadd.xlane.f32.xlu0 %v495_v1  ;;  %2426 = vmatpush1.bf16.msra.mxu1 %v2425_v46  ;;  %s3013_s27 = scalar_lea.vmem [#allocation4], %s2060_s23  ;;  %s1843_s25 = scalar_lea.sflag [#allocation5], %s3009_s0 }
  0x22   : > { %2412 = vmatprep.subr.bf16.mxu0 %v2411_v47  ;;  %2428 = vmatprep.subr.bf16.mxu1 %v2427_v51  ;;  %s1873_s15 = sshll.u32 %s3013_s27, 4  ;;  %s2729_s1 = smov [#allocation4]   ;;  %s3264_s15 = int_to_ptr.vmem [resolvable:$true] %s1873_s15 }
  0x23   : > { %s2616_s23 = sshll.u32 %s2729_s1, 4  ;;  %s2617_s23 = int_to_ptr.vmem [resolvable:$false] %s2616_s23 }
  0x24   : > { %2414 = vmatpush1.bf16.msra.mxu0 %v2413_v54  ;;  %v841_v54 = vld [vmem:[%s2971_s20 + $0x18] sm:$0xff]  ;;  %p2619_p1 = scmp.lt.s32.totalorder %s3264_s15, %s2617_s23 }
  0x25   : > { %2430 = vmatpush1.bf16.msra.mxu1 %v2429_v55  ;;  %2219 = vmatprep.subr.mxu0 %v2724_v23 }
  0x26   : > { %2224 = vmatprep.subr.mxu1 %v2724_v23 }
  0xae   : > { %v497_v2 = vpop.xlane.xlu0 %496 }
  0xaf   : > { %v499_v3 = vmul.f32 0.015625, %v497_v2  ;;  %v839_v2 = vld [vmem:[%s2971_s20 + $0x8] sm:$0xff] }
  0xb1   : > { %v2851_v4 = vsub.f32 %v2846_v0, %v499_v3  ;;  %v838_v3 = vld [vmem:[%s2971_s20] sm:$0xff] }
  0xb3   : > { %v501_v5 = vmul.f32 %v2851_v4, %v2851_v4 }
  0xb5   : > { %v502_v6 = vsel %vm494_vm0, %v501_v5, 0.0 }
  0xb6   : > { %503 = vadd.xlane.f32.xlu0 %v502_v6  ;;  %v707_v6 = vlaneseq }
  0xb8   : > { %v708_v8 = vshrl.u32 %v707_v6, 7 }
  0xba   : > { %v741_v26 = vsub.s32 %v738_v14, %v708_v8 }
 0x143   : > { %v504_v56 = vpop.xlane.xlu0 %503 }
 0x144   : > { %v505_v57 = vmul.f32 0.015625, %v504_v56 }
 0x146   : > { %v506_v58 = vadd.f32 1e-06, %v505_v57 }
 0x148   : > { %2594 = vrsqrt.f32 %v506_v58 }
 0x152   : > { %v2595_v59 = vpop.eup %2594 }
 0x153   : > { %v508_v61 = vmul.f32 %v2595_v59, %v2851_v4  ;;  %v2726_v4 = vmov 1983009808  }
 0x154   : > { %v705_v5 = vunpack.c.l.s4 %v2726_v4 }
 0x155   : > { %v516_v63 = vmul.f32 %v2066_v60, %v508_v61 }
 0x156   : > { %v706_v7 = vunpack.c.0.s8 %v705_v5 }
 0x157   : > { %v524_v1 = vadd.f32 %v2067_v62, %v516_v63 }
 0x158   : > { %v709_v11 = vsub.s32 %v706_v7, %v708_v8 }
 0x159   : > { %2068 = vmatmul.mubr.msk.f32.vlgmr.msra.gmra.mrb[0].mxu0 %vm494_vm0, %v524_v1  ;;  %2069 = vmatmul.mubr.msk.f32.vlgmr.msra.gmra.mrb[0].mxu1 %vm494_vm0, %v524_v1 }
 0x15a   : > { %2221 = vmatprep.mubr.msk.f32.mxu0 %vm2725_vm1, %v2724_v23  ;;  %2226 = vmatprep.mubr.msk.f32.mxu1 %vm2725_vm1, %v2724_v23 }
 0x15b   : > { %2225 = vmatpush3.xpose.msra.mxu1 %v839_v2  ;;  %2220 = vmatpush3.xpose.msra.mxu0 %v838_v3 }
 0x15c   : > { %2229 = vmatprep.subr.mxu0 %v2724_v23  ;;  %2234 = vmatprep.subr.mxu1 %v2724_v23 }
 0x22c   : > { %v626_v12 = vpop.f32.mrb[0].mxu0  ;;  %v697_v13 = vpop.f32.mrb[0].mxu1 }
 0x22d   : > { %v702_v15 = vcombine.low %v626_v12, %v697_v13  ;;  %v703_v16 = vcombine.high %v626_v12, %v697_v13  ;;  %v628_v17 = vpop.f32.mrb[1].mxu0  ;;  %v699_v18 = vpop.f32.mrb[1].mxu1 }
 0x22e   : > { %v718_v19 = vcombine.low %v628_v17, %v699_v18  ;;  %v719_v20 = vcombine.high %v628_v17, %v699_v18 }
 0x22f   : > { %v710_v21 = vrot.slane %v702_v15, %v709_v11  ;;  %v717_v22 = vrot.slane %v703_v16, %v709_v11 }
 0x230   : > { %v726_v24 = vrot.slane %v718_v19, %v709_v11  ;;  %v733_v25 = vrot.slane %v719_v20, %v709_v11 }
 0x232   : > { %v734_v27 = vcombine.low %v710_v21, %v726_v24  ;;  %v735_v28 = vcombine.high %v710_v21, %v726_v24  ;;  %v750_v29 = vcombine.low %v717_v22, %v733_v25  ;;  %v751_v30 = vcombine.high %v717_v22, %v733_v25 }
 0x234   : > { %v742_v31 = vrot.slane %v734_v27, %v741_v26  ;;  %v749_v32 = vrot.slane %v735_v28, %v741_v26  ;;  %v758_v33 = vrot.slane %v750_v29, %v741_v26  ;;  %v765_v34 = vrot.slane %v751_v30, %v741_v26  ;;  %v843_v27 = vld [vmem:[%s478_s26 + $0x8] sm:$0xff]  ;;  %v842_v28 = vld [vmem:[%s478_s26] sm:$0xff] }
 0x236   : > { %v770_v35 = vcombine.low %v742_v31, %v749_v32  ;;  %v2070_v36 = vcombine.high %v742_v31, %v749_v32  ;;  %v786_v37 = vcombine.low %v758_v33, %v765_v34  ;;  %v2071_v38 = vcombine.high %v758_v33, %v765_v34 }
 0x238   : > { %v777_v39 = vrot.slane %v770_v35, %v709_v11  ;;  %v785_v40 = vrot.slane %v2070_v36, %v709_v11  ;;  %v793_v41 = vrot.slane %v786_v37, %v709_v11  ;;  %v801_v42 = vrot.slane %v2071_v38, %v709_v11  ;;  %v845_v35 = vld [vmem:[%s478_s26 + $0x18] sm:$0xff]  ;;  %v844_v37 = vld [vmem:[%s478_s26 + $0x10] sm:$0xff]  ;;  %v2076_v38 = vld [vmem:[%s3357_s4 + $0x80] sm:$0xff]  ;;  %s2612_s26 = scalar_lea.vmem %s3264_s15, 512 }
 0x239   : > { %p2613_p12 = scmp.ne.s32.totalorder %s3264_s15, %s2612_s26 }
 0x23a   : > { %v802_v43 = vcombine.low %v777_v39, %v785_v40  ;;  %v818_v44 = vcombine.low %v793_v41, %v801_v42  ;;  %v803_v45 = vcombine.high %v777_v39, %v785_v40  ;;  %v819_v46 = vcombine.high %v793_v41, %v801_v42  ;;  %v2077_v41 = vld [vmem:[%s3357_s4 + $0x88] sm:$0xff] }
 0x23b   : > { %v2728_v42 = vmov 0.0|0.0   ;;  %p2614_p13 = pnand %p2613_p12, %p2823_p4 }
 0x23c   : > { %v810_v47 = vrot.slane %v802_v43, %v741_v26  ;;  %v826_v48 = vrot.slane %v818_v44, %v741_v26  ;;  %v817_v49 = vrot.slane %v803_v45, %v741_v26  ;;  %v833_v50 = vrot.slane %v819_v46, %v741_v26  ;;  %v1467_v43 = vld [vmem:[%s3357_s4] sm:$0xff]  ;;  %v1468_v44 = vld [vmem:[%s3357_s4 + $0x8] sm:$0xff] }
 0x23d   : > { %p2615_p0 = pneg %p2614_p13 }
 0x23e   : > { %v834_v51 = vcombine.low %v810_v47, %v826_v48  ;;  %v835_v52 = vcombine.high %v810_v47, %v826_v48  ;;  %v836_v55 = vcombine.low %v817_v49, %v833_v50  ;;  %v837_v56 = vcombine.high %v817_v49, %v833_v50  ;;  %v2078_v48 = vld [vmem:[%s3357_s4 + $0x90] sm:$0xff] }
 0x23f   : > { %v2432_v47 = vpack.c.bf16 %v2077_v41, %v2076_v38  ;;  %v2456_v49 = vpack.c.bf16 %v1468_v44, %v1467_v43  ;;  %v2096_v41 = vld [vmem:[%s3357_s4 + $0x120] sm:$0xff]  ;;  %v2097_v43 = vld [vmem:[%s3357_s4 + $0x128] sm:$0xff]  ;;  %v2110_v44 = vld [vmem:[%s3357_s4 + $0x190] sm:$0xff] }
 0x240   : > { %2222 = vmatmul.mubr.f32.vlgmr.msra.gmra.mrb[2].mxu0 %v834_v51  ;;  %2227 = vmatmul.mubr.f32.vlgmr.msra.gmra.mrb[2].mxu1 %v835_v52  ;;  %v2079_v51 = vld [vmem:[%s3357_s4 + $0x98] sm:$0xff]  ;;  %v1469_v52 = vld [vmem:[%s3357_s4 + $0x10] sm:$0xff] }
 0x241   : > { %2230 = vmatpush3.xpose.msra.mxu0 %v840_v53  ;;  %2235 = vmatpush3.xpose.msra.mxu1 %v841_v54  ;;  %v1470_v53 = vld [vmem:[%s3357_s4 + $0x18] sm:$0xff]  ;;  %v2435_v54 = vpack.c.bf16 %v2079_v51, %v2078_v48  ;;  %v2486_v48 = vpack.c.bf16 %v2097_v43, %v2096_v41 }
 0x242   : > { %2231 = vmatprep.mubr.msk.f32.mxu0 %vm2725_vm1, %v2724_v23  ;;  %2236 = vmatprep.mubr.msk.f32.mxu1 %vm2725_vm1, %v2724_v23  ;;  %v2099_v51 = vld [vmem:[%s3357_s4 + $0x138] sm:$0xff] }
 0x243   : > { %2244 = vmatprep.subr.mxu1 %v2724_v23  ;;  %2239 = vmatprep.subr.mxu0 %v2724_v23 }
 0x244   : > { %2232 = vmatmul.mubr.f32.vlgmr.msra.gmra.mrb[4].mxu0 %v836_v55  ;;  %2237 = vmatmul.mubr.f32.vlgmr.msra.gmra.mrb[4].mxu1 %v837_v56  ;;  %v2080_v55 = vld [vmem:[%s3357_s4 + $0xa0] sm:$0xff]  ;;  %v2459_v56 = vpack.c.bf16 %v1470_v53, %v1469_v52  ;;  %v2113_v53 = vld [vmem:[%s3357_s4 + $0x1a8] sm:$0xff] }
 0x245   : > { %2246 = vmatprep.mubr.msk.f32.mxu1 %vm2725_vm1, %v2724_v23  ;;  %2241 = vmatprep.mubr.msk.f32.mxu0 %vm2725_vm1, %v2724_v23  ;;  %v2112_v52 = vld [vmem:[%s3357_s4 + $0x1a0] sm:$0xff] }
 0x246   : > { %2245 = vmatpush3.msra.mxu1 %v843_v27  ;;  %2240 = vmatpush3.msra.mxu0 %v842_v28  ;;  %v1481_v27 = vld [vmem:[%s3357_s4 + $0x70] sm:$0xff]  ;;  %v1482_v28 = vld [vmem:[%s3357_s4 + $0x78] sm:$0xff] }
 0x247   : > { %2254 = vmatprep.subr.mxu1 %v2724_v23  ;;  %2249 = vmatprep.subr.mxu0 %v2724_v23 }
 0x313   : > { %v912_v57 = vpop.f32.mrb[2].mxu0  ;;  %v982_v58 = vpop.f32.mrb[2].mxu1 }
 0x314   : > { %v2223_v59 = vpop.f32.mrb[3].mxu0  ;;  %v2228_v60 = vpop.f32.mrb[3].mxu1  ;;  %v1130_v61 = vsel %vm1126_vm2, %v982_v58, -inf  ;;  %v1127_v3 = vsel %vm1126_vm2, %v912_v57, -inf }
 0x315   : > { %1131 = vmax.xlane.f32.xlu1 %v1130_v61  ;;  %v1472_v59 = vld [vmem:[%s3357_s4 + $0x28] sm:$0xff]  ;;  %v2082_v61 = vld [vmem:[%s3357_s4 + $0xb0] sm:$0xff] }
 0x317   : > { %v1052_v62 = vpop.f32.mrb[4].mxu0  ;;  %v1122_v63 = vpop.f32.mrb[4].mxu1 }
 0x318   : > { %v2233_v1 = vpop.f32.mrb[5].mxu0  ;;  %v2238_v2 = vpop.f32.mrb[5].mxu1  ;;  %v1133_v4 = vsel %vm1126_vm2, %v1052_v62, -inf  ;;  %v1136_v5 = vsel %vm1126_vm2, %v1122_v63, -inf }
 0x319   : > { %1128 = vmax.xlane.f32.xlu1 %v1127_v3  ;;  %1134 = vmax.xlane.f32.xlu0 %v1133_v4  ;;  %v1473_v1 = vld [vmem:[%s3357_s4 + $0x30] sm:$0xff]  ;;  %v1474_v2 = vld [vmem:[%s3357_s4 + $0x38] sm:$0xff]  ;;  %v2084_v4 = vld [vmem:[%s3357_s4 + $0xc0] sm:$0xff] }
 0x31d   : > { %1137 = vmax.xlane.f32.xlu1 %v1136_v5  ;;  %v2465_v5 = vpack.c.bf16 %v1474_v2, %v1473_v1  ;;  %v2102_v2 = vld [vmem:[%s3357_s4 + $0x150] sm:$0xff] }
 0x3a2   : > { %v1132_v6 = vpop.xlane.xlu1 %1131 }
 0x3a3   : > { %v1140_v7 = vsub.f32 %v982_v58, %v1132_v6  ;;  %v1471_v58 = vld [vmem:[%s3357_s4 + $0x20] sm:$0xff]  ;;  %v2085_v6 = vld [vmem:[%s3357_s4 + $0xc8] sm:$0xff] }
 0x3a5   : > { %v1145_v8 = vmul.f32 1.442695, %v1140_v7  ;;  %v1475_v7 = vld [vmem:[%s3357_s4 + $0x40] sm:$0xff] }
 0x3a6   : > { %v1129_v9 = vpop.xlane.xlu1 %1128  ;;  %v1135_v10 = vpop.xlane.xlu0 %1134 }
 0x3a7   : > { %2596 = vpow2.f32 %v1145_v8  ;;  %v1139_v11 = vsub.f32 %v912_v57, %v1129_v9  ;;  %v1141_v12 = vsub.f32 %v1052_v62, %v1135_v10  ;;  %v2081_v57 = vld [vmem:[%s3357_s4 + $0xa8] sm:$0xff]  ;;  %v2462_v62 = vpack.c.bf16 %v1472_v59, %v1471_v58  ;;  %v2086_v10 = vld [vmem:[%s3357_s4 + $0xd0] sm:$0xff] }
 0x3a8   : > { %v2438_v60 = vpack.c.bf16 %v2081_v57, %v2080_v55  ;;  %v1476_v8 = vld [vmem:[%s3357_s4 + $0x48] sm:$0xff]  ;;  %v2444_v9 = vpack.c.bf16 %v2085_v6, %v2084_v4  ;;  %v2510_v59 = vpack.c.bf16 %v2113_v53, %v2112_v52  ;;  %v2116_v4 = vld [vmem:[%s3357_s4 + $0x1c0] sm:$0xff] }
 0x3a9   : > { %v1143_v13 = vmul.f32 1.442695, %v1139_v11  ;;  %v1147_v14 = vmul.f32 1.442695, %v1141_v12  ;;  %v2468_v11 = vpack.c.bf16 %v1476_v8, %v1475_v7  ;;  %v2087_v12 = vld [vmem:[%s3357_s4 + $0xd8] sm:$0xff]  ;;  %v2104_v8 = vld [vmem:[%s3357_s4 + $0x160] sm:$0xff] }
 0x3aa   : > { %v1138_v15 = vpop.xlane.xlu1 %1137 }
 0x3ab   : > { %2598 = vpow2.f32 %v1143_v13  ;;  %v1142_v16 = vsub.f32 %v1122_v63, %v1138_v15  ;;  %v2083_v63 = vld [vmem:[%s3357_s4 + $0xb8] sm:$0xff]  ;;  %v1477_v13 = vld [vmem:[%s3357_s4 + $0x50] sm:$0xff]  ;;  %v2447_v15 = vpack.c.bf16 %v2087_v12, %v2086_v10 }
 0x3ac   : > { %2600 = vpow2.f32 %v1147_v14  ;;  %v2441_v3 = vpack.c.bf16 %v2083_v63, %v2082_v61  ;;  %v1478_v14 = vld [vmem:[%s3357_s4 + $0x58] sm:$0xff]  ;;  %v2101_v61 = vld [vmem:[%s3357_s4 + $0x148] sm:$0xff]  ;;  %v2118_v10 = vld [vmem:[%s3357_s4 + $0x1d0] sm:$0xff] }
 0x3ad   : > { %v1149_v17 = vmul.f32 1.442695, %v1142_v16  ;;  %v2088_v16 = vld [vmem:[%s3357_s4 + $0xe0] sm:$0xff] }
 0x3af   : > { %2602 = vpow2.f32 %v1149_v17  ;;  %v2471_v17 = vpack.c.bf16 %v1478_v14, %v1477_v13  ;;  %v2106_v14 = vld [vmem:[%s3357_s4 + $0x170] sm:$0xff] }
 0x3b1   : > { %v2597_v18 = vpop.eup %2596 }
 0x3b2   : > { %v1154_v19 = vsel %vm1126_vm2, %v2597_v18, 0.0 }
 0x3b3   : > { %1155 = vadd.xlane.f32.xlu0 %v1154_v19  ;;  %v1479_v19 = vld [vmem:[%s3357_s4 + $0x60] sm:$0xff] }
 0x3b5   : > { %v2599_v20 = vpop.eup %2598 }
 0x3b6   : > { %v2601_v21 = vpop.eup %2600  ;;  %v1151_v22 = vsel %vm1126_vm2, %v2599_v20, 0.0 }
 0x3b7   : > { %1152 = vadd.xlane.f32.xlu1 %v1151_v22  ;;  %v1157_v24 = vsel %vm1126_vm2, %v2601_v21, 0.0 }
 0x3b8   : > { %1158 = vadd.xlane.f32.xlu0 %v1157_v24  ;;  %v2090_v24 = vld [vmem:[%s3357_s4 + $0xf0] sm:$0xff] }
 0x3b9   : > { %v2603_v25 = vpop.eup %2602 }
 0x3ba   : > { %v1160_v26 = vsel %vm1126_vm2, %v2603_v25, 0.0 }
 0x3bb   : > { %1161 = vadd.xlane.f32.xlu1 %v1160_v26 }
 0x440   : > { %v1156_v29 = vpop.xlane.xlu0 %1155 }
 0x441   : > { %2604 = vrcp.f32 %v1156_v29  ;;  %v2477_v29 = vpack.c.bf16 %v1482_v28, %v1481_v27 }
 0x444   : > { %v1153_v30 = vpop.xlane.xlu1 %1152 }
 0x445   : > { %2606 = vrcp.f32 %v1153_v30  ;;  %v1159_v31 = vpop.xlane.xlu0 %1158  ;;  %v2092_v30 = vld [vmem:[%s3357_s4 + $0x100] sm:$0xff] }
 0x446   : > { %2608 = vrcp.f32 %v1159_v31  ;;  %v2093_v31 = vld [vmem:[%s3357_s4 + $0x108] sm:$0xff] }
 0x448   : > { %v1162_v32 = vpop.xlane.xlu1 %1161 }
 0x449   : > { %2610 = vrcp.f32 %v1162_v32  ;;  %v2480_v32 = vpack.c.bf16 %v2093_v31, %v2092_v30 }
 0x44b   : > { %v2605_v33 = vpop.eup %2604 }
 0x44c   : > { %v1166_v34 = vmul.f32 %v2605_v33, %v2597_v18  ;;  %v2089_v18 = vld [vmem:[%s3357_s4 + $0xe8] sm:$0xff]  ;;  %v2094_v33 = vld [vmem:[%s3357_s4 + $0x110] sm:$0xff] }
 0x44e   : > { %2247 = vmatmul.mubr.msk.f32.vlgmr.msra.gmra.mrb[6].mxu1 %vm1126_vm2, %v1166_v34  ;;  %1172 = vst.msk [vmem:[%s3013_s27 + $0x8] sm:$0xff] %vm1126_vm2, %v1166_v34  ;;  %v2095_v34 = vld [vmem:[%s3357_s4 + $0x118] sm:$0xff] }
 0x44f   : > { %v2607_v36 = vpop.eup %2606  ;;  %2255 = vmatpush3.msra.mxu1 %v845_v35  ;;  %2256 = vmatprep.mubr.msk.f32.mxu1 %vm2725_vm1, %v2724_v23  ;;  %v2108_v35 = vld [vmem:[%s3357_s4 + $0x180] sm:$0xff] }
 0x450   : > { %v2609_v39 = vpop.eup %2608  ;;  %v1164_v40 = vmul.f32 %v2607_v36, %v2599_v20  ;;  %2455 = vmatprep.subr.bf16.mxu1 %v2728_v42  ;;  %v1480_v20 = vld [vmem:[%s3357_s4 + $0x68] sm:$0xff] }
 0x451   : > { %v1168_v45 = vmul.f32 %v2609_v39, %v2601_v21  ;;  %v2450_v21 = vpack.c.bf16 %v2089_v18, %v2088_v16  ;;  %v2474_v22 = vpack.c.bf16 %v1480_v20, %v1479_v19  ;;  %v2109_v36 = vld [vmem:[%s3357_s4 + $0x188] sm:$0xff]  ;;  %v2483_v39 = vpack.c.bf16 %v2095_v34, %v2094_v33  ;;  %v2120_v16 = vld [vmem:[%s3357_s4 + $0x1e0] sm:$0xff]  ;;  %v2122_v20 = vld [vmem:[%s3357_s4 + $0x1f0] sm:$0xff] }
 0x452   : > { %2242 = vmatmul.mubr.msk.f32.vlgmr.msra.gmra.mrb[6].mxu0 %vm1126_vm2, %v1164_v40  ;;  %1171 = vst.msk [vmem:[%s3013_s27] sm:$0xff] %vm1126_vm2, %v1164_v40  ;;  %v2504_v40 = vpack.c.bf16 %v2109_v36, %v2108_v35 }
 0x453   : > { %v2611_v46 = vpop.eup %2610  ;;  %2250 = vmatpush3.msra.mxu0 %v844_v37  ;;  %2251 = vmatprep.mubr.msk.f32.mxu0 %vm2725_vm1, %v2724_v23  ;;  %1173 = vst.msk [vmem:[%s3013_s27 + $0x10] sm:$0xff] %vm1126_vm2, %v1168_v45 }
 0x454   : > { %v1170_v50 = vmul.f32 %v2611_v46, %v2603_v25  ;;  %2431 = vmatprep.subr.bf16.mxu0 %v2728_v42  ;;  %v2091_v25 = vld [vmem:[%s3357_s4 + $0xf8] sm:$0xff] }
 0x455   : > { %v2453_v26 = vpack.c.bf16 %v2091_v25, %v2090_v24 }
 0x456   : > { %2252 = vmatmul.mubr.msk.f32.vlgmr.msra.gmra.mrb[8].mxu0 %vm1126_vm2, %v1168_v45  ;;  %2257 = vmatmul.mubr.msk.f32.vlgmr.msra.gmra.mrb[8].mxu1 %vm1126_vm2, %v1170_v50  ;;  %1174 = vst.msk [vmem:[%s3013_s27 + $0x18] sm:$0xff] %vm1126_vm2, %v1170_v50  ;;  %v2111_v45 = vld [vmem:[%s3357_s4 + $0x198] sm:$0xff]  ;;  %v2098_v50 = vld [vmem:[%s3357_s4 + $0x130] sm:$0xff]  ;;  %s2618_s27 = scalar_lea.vmem %s2617_s23, 1024 }
 0x457   : > { %2433 = vmatpush3.bf16.msra.mxu0 %v2432_v47  ;;  %2457 = vmatpush3.bf16.msra.mxu1 %v2456_v49  ;;  %v2507_v49 = vpack.c.bf16 %v2111_v45, %v2110_v44  ;;  %v2489_v58 = vpack.c.bf16 %v2099_v51, %v2098_v50  ;;  %p2620_p2 = scmp.lt.s32.totalorder %s2618_s27, %s2612_s26 }
 0x458   : > { %2434 = vmatprep.subr.bf16.mxu0 %v2728_v42  ;;  %2458 = vmatprep.subr.bf16.mxu1 %v2728_v42 }
 0x459   : > { %2291 = vmatprep.mubr.msk.f32.mxu0 %vm2725_vm1, %v2724_v23  ;;  %2326 = vmatprep.mubr.msk.f32.mxu1 %vm2725_vm1, %v2724_v23  ;;  %p2621_p3 = por %p2620_p2, %p2619_p1 }
 0x45b   : > { %2436 = vmatpush3.bf16.msra.mxu0 %v2435_v54  ;;  %2460 = vmatpush3.bf16.msra.mxu1 %v2459_v56  ;;  %p2622_p5 = pnand %p2621_p3, %p2615_p0 }
 0x45c   : > { %2437 = vmatprep.subr.bf16.mxu0 %v2728_v42  ;;  %2461 = vmatprep.subr.bf16.mxu1 %v2728_v42 }
 0x45f   : > { %2439 = vmatpush3.bf16.msra.mxu0 %v2438_v60  ;;  %2463 = vmatpush3.bf16.msra.mxu1 %v2462_v62  ;;  %v2100_v60 = vld [vmem:[%s3357_s4 + $0x140] sm:$0xff]  ;;  %v2115_v62 = vld [vmem:[%s3357_s4 + $0x1b8] sm:$0xff] }
 0x460   : > { %2440 = vmatprep.subr.bf16.mxu0 %v2728_v42  ;;  %2464 = vmatprep.subr.bf16.mxu1 %v2728_v42  ;;  %v2492_v63 = vpack.c.bf16 %v2101_v61, %v2100_v60 }
 0x463   : > { %2442 = vmatpush3.bf16.msra.mxu0 %v2441_v3  ;;  %2466 = vmatpush3.bf16.msra.mxu1 %v2465_v5  ;;  %v2103_v3 = vld [vmem:[%s3357_s4 + $0x158] sm:$0xff]  ;;  %v2117_v5 = vld [vmem:[%s3357_s4 + $0x1c8] sm:$0xff] }
 0x464   : > { %2443 = vmatprep.subr.bf16.mxu0 %v2728_v42  ;;  %2467 = vmatprep.subr.bf16.mxu1 %v2728_v42  ;;  %v2495_v6 = vpack.c.bf16 %v2103_v3, %v2102_v2  ;;  %v2516_v7 = vpack.c.bf16 %v2117_v5, %v2116_v4 }
 0x467   : > { %2445 = vmatpush3.bf16.msra.mxu0 %v2444_v9  ;;  %2469 = vmatpush3.bf16.msra.mxu1 %v2468_v11  ;;  %v2105_v9 = vld [vmem:[%s3357_s4 + $0x168] sm:$0xff]  ;;  %v2119_v11 = vld [vmem:[%s3357_s4 + $0x1d8] sm:$0xff] }
 0x468   : > { %2446 = vmatprep.subr.bf16.mxu0 %v2728_v42  ;;  %2470 = vmatprep.subr.bf16.mxu1 %v2728_v42  ;;  %v2498_v12 = vpack.c.bf16 %v2105_v9, %v2104_v8  ;;  %v2519_v13 = vpack.c.bf16 %v2119_v11, %v2118_v10 }
 0x46b   : > { %2448 = vmatpush3.bf16.msra.mxu0 %v2447_v15  ;;  %2472 = vmatpush3.bf16.msra.mxu1 %v2471_v17  ;;  %v2107_v15 = vld [vmem:[%s3357_s4 + $0x178] sm:$0xff]  ;;  %v2121_v17 = vld [vmem:[%s3357_s4 + $0x1e8] sm:$0xff] }
 0x46c   : > { %2449 = vmatprep.subr.bf16.mxu0 %v2728_v42  ;;  %2473 = vmatprep.subr.bf16.mxu1 %v2728_v42  ;;  %v2501_v18 = vpack.c.bf16 %v2107_v15, %v2106_v14  ;;  %v2522_v19 = vpack.c.bf16 %v2121_v17, %v2120_v16 }
 0x46f   : > { %2451 = vmatpush3.bf16.msra.mxu0 %v2450_v21  ;;  %2475 = vmatpush3.bf16.msra.mxu1 %v2474_v22  ;;  %v2123_v21 = vld [vmem:[%s3357_s4 + $0x1f8] sm:$0xff] }
 0x470   : > { %2452 = vmatprep.subr.bf16.mxu0 %v2728_v42  ;;  %2476 = vmatprep.subr.bf16.mxu1 %v2728_v42  ;;  %v2525_v22 = vpack.c.bf16 %v2123_v21, %v2122_v20 }
 0x473   : > { %2454 = vmatpush3.bf16.msra.mxu0 %v2453_v26  ;;  %2478 = vmatpush3.bf16.msra.mxu1 %v2477_v29 }
 0x474   : > { %2479 = vmatprep.subr.bf16.mxu0 %v2728_v42  ;;  %2503 = vmatprep.subr.bf16.mxu1 %v2728_v42 }
 0x521   : > { %v1317_v37 = vpop.f32.mrb[6].mxu1 }
 0x522   : > { %v2248_v38 = vpop.f32.mrb[7].mxu1  ;;  %2292 = vmatmul.mubr.f32.vlgmr.msra.gmra.mrb[10].mxu0 %v1317_v37 }
 0x523   : > { %2481 = vmatpush3.bf16.msra.mxu0 %v2480_v32  ;;  %2361 = vmatprep.mubr.msk.f32.mxu0 %vm2725_vm1, %v2724_v23 }
 0x524   : > { %2482 = vmatprep.subr.bf16.mxu0 %v2728_v42 }
 0x525   : > { %v1244_v46 = vpop.f32.mrb[6].mxu0 }
 0x526   : > { %v2243_v47 = vpop.f32.mrb[7].mxu0  ;;  %2327 = vmatmul.mubr.f32.vlgmr.msra.gmra.mrb[10].mxu1 %v1244_v46 }
 0x527   : > { %2484 = vmatpush3.bf16.msra.mxu0 %v2483_v39  ;;  %2505 = vmatpush3.bf16.msra.mxu1 %v2504_v40 }
 0x528   : > { %2485 = vmatprep.subr.bf16.mxu0 %v2728_v42  ;;  %2506 = vmatprep.subr.bf16.mxu1 %v2728_v42 }
 0x529   : > { %v1390_v54 = vpop.f32.mrb[8].mxu0  ;;  %v1463_v55 = vpop.f32.mrb[8].mxu1  ;;  %2396 = vmatprep.mubr.msk.f32.mxu1 %vm2725_vm1, %v2724_v23  ;;  %v2114_v23 = vld [vmem:[%s3357_s4 + $0x1b0] sm:$0xff] }
 0x52a   : > { %v2253_v56 = vpop.f32.mrb[9].mxu0  ;;  %v2258_v57 = vpop.f32.mrb[9].mxu1  ;;  %v2513_v1 = vpack.c.bf16 %v2115_v62, %v2114_v23 }
 0x52b   : > { %2487 = vmatpush3.bf16.msra.mxu0 %v2486_v48  ;;  %2508 = vmatpush3.bf16.msra.mxu1 %v2507_v49 }
 0x52c   : > { %2488 = vmatprep.subr.bf16.mxu0 %v2728_v42  ;;  %2509 = vmatprep.subr.bf16.mxu1 %v2728_v42 }
 0x52f   : > { %2490 = vmatpush3.bf16.msra.mxu0 %v2489_v58  ;;  %2511 = vmatpush3.bf16.msra.mxu1 %v2510_v59 }
 0x530   : > { %2491 = vmatprep.subr.bf16.mxu0 %v2728_v42  ;;  %2512 = vmatprep.subr.bf16.mxu1 %v2728_v42 }
 0x533   : > { %2493 = vmatpush3.bf16.msra.mxu0 %v2492_v63  ;;  %2514 = vmatpush3.bf16.msra.mxu1 %v2513_v1 }
 0x534   : > { %2494 = vmatprep.subr.bf16.mxu0 %v2728_v42  ;;  %2515 = vmatprep.subr.bf16.mxu1 %v2728_v42 }
 0x537   : > { %2496 = vmatpush3.bf16.msra.mxu0 %v2495_v6  ;;  %2517 = vmatpush3.bf16.msra.mxu1 %v2516_v7 }
 0x538   : > { %2497 = vmatprep.subr.bf16.mxu0 %v2728_v42  ;;  %2518 = vmatprep.subr.bf16.mxu1 %v2728_v42 }
 0x53b   : > { %2499 = vmatpush3.bf16.msra.mxu0 %v2498_v12  ;;  %2520 = vmatpush3.bf16.msra.mxu1 %v2519_v13 }
 0x53c   : > { %2500 = vmatprep.subr.bf16.mxu0 %v2728_v42  ;;  %2521 = vmatprep.subr.bf16.mxu1 %v2728_v42 }
 0x53f   : > { %2502 = vmatpush3.bf16.msra.mxu0 %v2501_v18  ;;  %2523 = vmatpush3.bf16.msra.mxu1 %v2522_v19 }
 0x540   : > { %2524 = vmatprep.subr.bf16.mxu1 %v2728_v42 }
 0x542   : > { %2362 = vmatmul.mubr.f32.vlgmr.msra.gmra.mrb[12].mxu0 %v1390_v54 }
 0x543   : > { %2526 = vmatpush3.bf16.msra.mxu1 %v2525_v22 }
 0x546   : > { %2397 = vmatmul.mubr.f32.vlgmr.msra.gmra.mrb[12].mxu1 %v1463_v55 }
 0x547   : > { %2625 = shalt.err (!%p2622_p5)
}
 0x548   : > { %s2626_s28 = scalar_lea.hbm %s3269_s24, 512  ;;  %s2630_s18 = scalar_lea.hbm %s3362_s9, 1024 }
 0x549   : > { %p2627_p6 = scmp.ne.s32.totalorder %s3269_s24, %s2626_s28  ;;  %p2631_p10 = scmp.lt.u32.totalorder %s3269_s24, %s3362_s9 }
 0x54a   : > { %p2632_p11 = scmp.lt.u32.totalorder %s2630_s18, %s2626_s28  ;;  %p2634_p13 = scmp.lt.u32.totalorder %s2626_s28, %s3269_s24 }
 0x54b   : > { %p2628_p7 = pnand %p2627_p6, %p2823_p4 }
 0x54c   : > { %p2633_p12 = por %p2632_p11, %p2631_p10 }
 0x54d   : > { %p2629_p9 = pneg %p2628_p7 }
 0x54e   : > { %p2635_p0 = por %p2634_p13, %p2633_p12 }
 0x550   : > { %p2636_p1 = pnand %p2635_p0, %p2629_p9 }
 0x552   : > { %2639 = shalt.err (!%p2636_p1)
}
 0x553   : > { %s2730_s26 = smov 128   ;;  %s2731_s23 = smov 8   ;;  %v2124_v28 = vld [vmem:[%s3358_s5] ss:$0 sm:$0xff] }
 0x554   : > { %2528 = dma.vmem_to_hbm [thread:$0]  (%p2823_p4), %s3264_s15, 512, %s3269_s24, %s1843_s25, %s2730_s26, %s2730_s26, %s2731_s23   ;;  %v1827_v32 = vadd.f32 %v2124_v28, %v2846_v0 }
 0x555   : > { %s2059_s27 = sshll.u32 %s3009_s0, 3  ;;  %s2127_s16 = sshll.u32 %s2714_s12, 7 }
 0x556   : > { %s445_s15 = scalar_lea.vmem [#allocation2], %s2059_s27  ;;  %s3304_s20 = scalar_lea.hbm %s3361_s8, %s2127_s16 }
 0x557   : > { %s1857_s24 = sshll.u32 %s445_s15, 4  ;;  %s1838_s1 = scalar_lea.sflag [#allocation3], %s3009_s0  ;;  %s3306_s24 = int_to_ptr.vmem [resolvable:$true] %s1857_s24 }
 0x558   : > { %s2640_s26 = scalar_lea.vmem %s3306_s24, 128  ;;  %s2732_s12 = smov [#allocation2]  }
 0x559   : > { %p2641_p2 = scmp.ne.s32.totalorder %s3306_s24, %s2640_s26  ;;  %s2644_s23 = sshll.u32 %s2732_s12, 4  ;;  %s2645_s23 = int_to_ptr.vmem [resolvable:$false] %s2644_s23 }
 0x55a   : > { %s2646_s27 = scalar_lea.vmem %s2645_s23, 256  ;;  %p2647_p6 = scmp.lt.s32.totalorder %s3306_s24, %s2645_s23 }
 0x55b   : > { %p2642_p3 = pnand %p2641_p2, %p2823_p4  ;;  %p2648_p7 = scmp.lt.s32.totalorder %s2646_s27, %s2640_s26 }
 0x55d   : > { %p2643_p5 = pneg %p2642_p3  ;;  %p2649_p9 = por %p2648_p7, %p2647_p6 }
 0x55f   : > { %p2650_p10 = pnand %p2649_p9, %p2643_p5 }
 0x5f5   : > { %v1566_v42 = vpop.f32.mrb[10].mxu0 }
 0x5f6   : > { %v2293_v24 = vpop.f32.mrb[11].mxu0 }
 0x5f9   : > { %v1636_v25 = vpop.f32.mrb[10].mxu1 }
 0x5fa   : > { %v1637_v26 = vadd.f32 %v1636_v25, %v1566_v42  ;;  %v2328_v27 = vpop.f32.mrb[11].mxu1 }
 0x615   : > { %v1723_v29 = vpop.f32.mrb[12].mxu0 }
 0x616   : > { %v1727_v30 = vadd.f32 %v1723_v29, %v1637_v26  ;;  %v2363_v31 = vpop.f32.mrb[13].mxu0 }
 0x619   : > { %v1811_v33 = vpop.f32.mrb[12].mxu1 }
 0x61a   : > { %v1815_v34 = vadd.f32 %v1811_v33, %v1727_v30  ;;  %v2398_v35 = vpop.f32.mrb[13].mxu1 }
 0x61c   : > { %v1828_v36 = vadd.f32 %v1827_v32, %v1815_v34 }
 0x61e   : > { %1829 = vst.msk [vmem:[%s445_s15] sm:$0xff] %vm494_vm0, %v1828_v36 }
 0x61f   : > { %2653 = shalt.err (!%p2650_p10)
}
 0x620   : > { %s2654_s0 = scalar_lea.hbm %s3304_s20, 128  ;;  %s2658_s16 = scalar_lea.hbm %s3361_s8, 256 }
 0x621   : > { %p2655_p11 = scmp.ne.s32.totalorder %s3304_s20, %s2654_s0  ;;  %p2659_p0 = scmp.lt.u32.totalorder %s3304_s20, %s3361_s8 }
 0x622   : > { %p2660_p1 = scmp.lt.u32.totalorder %s2658_s16, %s2654_s0  ;;  %p2662_p3 = scmp.lt.u32.totalorder %s2654_s0, %s3304_s20 }
 0x623   : > { %p2656_p12 = pnand %p2655_p11, %p2823_p4 }
 0x624   : > { %p2661_p2 = por %p2660_p1, %p2659_p0 }
 0x625   : > { %p2657_p13 = pneg %p2656_p12 }
 0x626   : > { %p2663_p5 = por %p2662_p3, %p2661_p2 }
 0x628   : > { %p2664_p6 = pnand %p2663_p5, %p2657_p13 }
 0x62a   : > { %2667 = shalt.err (!%p2664_p6)
}
 0x62b   : > { %2527 = dma.vmem_to_hbm [thread:$0]  (%p2823_p4), %s3306_s24, 128, %s3304_s20, %s1838_s1  }
 0x62c PF: > { %p2538_p7 = scmp.ge.s32.totalorder %s2722_s14, 2  ;;  %s1888_s18 = sand.u32 1, %s2702_s30  }
 0x62d   : > { %s1889_s26 = scalar_lea.sflag [#allocation3], %s1888_s18 }
 0x62e   : > { %p2532_p9 = pnand %p2538_p7, %p2830_p8 }
 0x630   : > { %2693 = dma.done.wait (!%p2532_p9), %s1889_s26, 128  }
 0x631   : > { %2695 = vsyncadd (!%p2532_p9), %s1889_s26, 4294967168  ;;  %s1898_s12 = scalar_lea.sflag [#allocation5], %s1888_s18 }
 0x632   : > { %2697 = dma.done.wait (!%p2532_p9), %s1898_s12, 512  }
 0x633   : > { %2699 = vsyncadd (!%p2532_p9), %s1898_s12, 4294966784  ;;  %s26_s14 = sadd.s32 1, %s2722_s14   ;;  %s3369_s30 = smov %s2706_s10 }
 0x634   : > { %p23_p10 = scmp.ge.s32.totalorder %s26_s14, 4   ;;  %s3370_s10 = smov %s2710_s11 }
 0x635   : > { %s3371_s11 = smov %s2836_s22  ;;  %s3372_s12 = smov %s2718_s13 }
 0x636   : > { %s3373_s13 = smov %s3375_s17  ;;  %25 = sbr.rel (!%p23_p10) target bundleno = 9 (0x9), region = 127 }
 0x63d   :  { %1903 = vsyncpa [#allocation3], 1 }
 0x63e   :  { %1905 = vsyncpa [#allocation3 + $0x1], 1 }
 0x63f   :  { %1906 = vsyncpa [#allocation5], 1 }
 0x640   :  { %1908 = vsyncpa [#allocation5 + $0x1], 1 }

</bundles_post_ra>
